<compile_context>
chip_gen: v7x
topology: tpu7x:2x2x1
jax: 0.10.0
libtpu: 0.0.40
codegen_flags: <defaults>
</compile_context>

<pallas_src>
import functools

import numpy as np
import jax
import jax.numpy as jnp
from jax import lax
from jax.experimental import pallas as pl
from jax.experimental.pallas import tpu as pltpu

N_BINS = 15
_LANES = 128
_MIB = 1024 * 1024


def _oe_stats_kernel(logits_ref, labels_ref, stats_ref,
                     cnt_sc, accsum_sc, confsum_sc, *, n_valid, ragged):
    shard = pl.program_id(0)
    step = pl.program_id(1)
    steps = pl.num_programs(1)

    @pl.when(step == 0)
    def _init():
        cnt_sc[...] = jnp.zeros_like(cnt_sc)
        accsum_sc[...] = jnp.zeros_like(accsum_sc)
        confsum_sc[...] = jnp.zeros_like(confsum_sc)

    logits = logits_ref[...].astype(jnp.float32)            # (TM, C)
    labels = labels_ref[...]                                 # (TM, 1) int32
    tm, c = logits.shape

    # confidence = max softmax value = 1 / sum(exp(logits - row_max))
    row_max = jnp.max(logits, axis=1, keepdims=True)         # (TM, 1)
    sumexp = jnp.sum(jnp.exp(logits - row_max), axis=1, keepdims=True)
    conf = 1.0 / sumexp                                      # (TM, 1)

    # prediction = first argmax (exact compare + iota/min: torch.max tie rule)
    col_idx = lax.broadcasted_iota(jnp.int32, (tm, c), 1)
    pred = jnp.min(jnp.where(logits == row_max, col_idx, c),
                   axis=1, keepdims=True)                    # (TM, 1)
    acc = (pred == labels).astype(jnp.float32)               # (TM, 1)

    # Lane-dense bin bounds from an iota (no extra inputs / DMA).
    # Lanes >= N_BINS get lo=2 / hi=3 so no confidence in (0, 1] can match.
    lane = lax.broadcasted_iota(jnp.int32, (1, _LANES), 1)
    lane_f = lane.astype(jnp.float32)
    lo = jnp.where(lane < N_BINS, lane_f / jnp.float32(N_BINS), jnp.float32(2.0))
    hi = jnp.where(lane < N_BINS, (lane_f + 1.0) / jnp.float32(N_BINS),
                   jnp.float32(3.0))

    def _accumulate(mask_rows):
        # (conf > lo) & (conf <= hi)  ==  (conf <= hi) - (conf <= lo) here,
        # since the bins tile (0, 1] and conf is always in (0, 1].
        in_bin = ((conf <= hi).astype(jnp.float32)
                  - (conf <= lo).astype(jnp.float32))        # (TM, 128)
        if mask_rows:
            row_idx = ((shard * steps + step) * tm
                       + lax.broadcasted_iota(jnp.int32, (tm, 1), 0))
            in_bin = in_bin * (row_idx < n_valid).astype(jnp.float32)
        cnt_sc[...] += jnp.sum(in_bin, axis=0, keepdims=True)
        accsum_sc[...] += jnp.sum(in_bin * acc, axis=0, keepdims=True)
        confsum_sc[...] += jnp.sum(in_bin * conf, axis=0, keepdims=True)

    if ragged:
        # Only tiles that actually contain padded rows pay for the mask.
        first_pad_tile = n_valid // tm                       # static
        gtile = shard * steps + step

        @pl.when(gtile < first_pad_tile)
        def _full_tile():
            _accumulate(False)

        @pl.when(gtile >= first_pad_tile)
        def _padded_tile():
            _accumulate(True)
    else:
        _accumulate(False)

    @pl.when(step == steps - 1)
    def _write_partials():
        # Fully overwrite this shard's (1, 3, 128) output block.
        stats_ref[0, 0:1, :] = cnt_sc[...]
        stats_ref[0, 1:2, :] = accsum_sc[...]
        stats_ref[0, 2:3, :] = confsum_sc[...]


def _device_kind():
    try:
        return jax.devices()[0].device_kind.lower()
    except Exception:
        return ""


def _round_up(x, m):
    return -(-x // m) * m


def overconfidence_error(logits, labels, *, tile_rows=None, force_shards=None):
    """logits: (N, C) float (any fp dtype); labels: (N,) int.

    Returns a float32 array of shape (1,), matching the PyTorch _OE module.
    """
    n, c = logits.shape
    kind = _device_kind()
    is_v7 = ("v7" in kind) or ("tpu7" in kind)
    is_v5e = ("v5e" in kind) or ("v5 lite" in kind) or ("v5lite" in kind)

    if is_v7:
        num_shards = 2                  # split the row reduction across 2 TCs
        vmem_budget = 40 * _MIB         # 64 MiB physical VMEM on v7x
        vmem_limit = 48 * _MIB
    elif ("v6" in kind) or ("v5" in kind) or ("v4" in kind):
        num_shards = 1
        vmem_budget = 64 * _MIB         # 128 MiB physical VMEM
        vmem_limit = 96 * _MIB
    else:                               # unknown backend: conservative sizing
        num_shards = 1
        vmem_budget = 40 * _MIB
        vmem_limit = 48 * _MIB
    if force_shards is not None:
        num_shards = int(force_shards)

    # ---- tile sizing: biggest tm whose working set fits the VMEM budget ----
    itemsize = jnp.dtype(logits.dtype).itemsize
    sublane_mult = max(8, 32 // itemsize)        # 8 for f32, 16 for bf16
    c_pad = _round_up(c, _LANES)                 # lane padding in VMEM
    per_row = (2 * c_pad * itemsize              # double-buffered logits block
               + 3 * c_pad * 4                   # f32 copy + exp temp + iota
               + 2 * _LANES * 4                  # labels block (2 buffers)
               + 2 * _LANES * 4)                 # (TM,128) binning temporaries
    if tile_rows is not None:
        tm = max(sublane_mult, _round_up(int(tile_rows), sublane_mult))
    else:
        tm = max(sublane_mult, min(vmem_budget // per_row, 8192))
        tm = min(tm, _round_up(-(-n // num_shards), sublane_mult))
        tm = max(sublane_mult, (tm // sublane_mult) * sublane_mult)

    steps_per_shard = -(-n // (num_shards * tm))
    n_pad = num_shards * steps_per_shard * tm
    ragged = n_pad != n

    if ragged:
        logits = jnp.pad(logits, ((0, n_pad - n), (0, 0)))
        labels = jnp.pad(labels, (0, n_pad - n))
    labels2d = labels.astype(jnp.int32).reshape(n_pad, 1)

    def _tile_idx(s, i):
        return (s * steps_per_shard + i, 0)

    logits_spec = pl.BlockSpec((tm, c), _tile_idx)
    if is_v5e and hasattr(pl, "Buffered"):
        try:   # cheap insurance against exposed DMA latency on v5e
            logits_spec = pl.BlockSpec((tm, c), _tile_idx,
                                       pipeline_mode=pl.Buffered(3))
        except TypeError:
            logits_spec = pl.BlockSpec((tm, c), _tile_idx)

    stats = pl.pallas_call(
        functools.partial(_oe_stats_kernel, n_valid=n, ragged=ragged),
        out_shape=jax.ShapeDtypeStruct((num_shards, 3, _LANES), jnp.float32),
        grid=(num_shards, steps_per_shard),
        in_specs=[
            logits_spec,                               # logits tile
            pl.BlockSpec((tm, 1), _tile_idx),          # labels tile
        ],
        out_specs=pl.BlockSpec((1, 3, _LANES), lambda s, i: (s, 0, 0)),
        scratch_shapes=[pltpu.VMEM((1, _LANES), jnp.float32)] * 3,
        compiler_params=pltpu.CompilerParams(
            dimension_semantics=("parallel", "arbitrary"),
            vmem_limit_bytes=vmem_limit,
        ),
    )(logits, labels2d)

    # Tiny 15-bin finalize in plain JAX: merge per-shard partial statistics.
    totals = jnp.sum(stats, axis=0)                   # (3, 128)
    counts = totals[0, :N_BINS]
    accsum = totals[1, :N_BINS]
    confsum = totals[2, :N_BINS]
    inv = 1.0 / jnp.maximum(counts, 1.0)
    acc_in_bin = accsum * inv
    conf_in_bin = confsum * inv
    prop_in_bin = counts * jnp.float32(1.0 / n)
    terms = jnp.where(
        counts > 0.0,
        jnp.maximum(conf_in_bin - acc_in_bin, 0.0) * conf_in_bin * prop_in_bin,
        jnp.float32(0.0),
    )
    return jnp.sum(terms).reshape(1)


def _reference_oe(logits, labels):
    """Pure-JAX transcription of the PyTorch _OE.forward formula."""
    n = logits.shape[0]
    bounds = np.linspace(0.0, 1.0, N_BINS + 1, dtype=np.float32)
    sm = jax.nn.softmax(logits.astype(jnp.float32), axis=1)
    conf = jnp.max(sm, axis=1)
    pred = jnp.argmax(sm, axis=1)
    acc = (pred == labels).astype(jnp.float32)
    oe = jnp.float32(0.0)
    for b in range(N_BINS):
        in_bin = (conf > bounds[b]) & (conf <= bounds[b + 1])
        cnt = jnp.sum(in_bin.astype(jnp.float32))
        prop = cnt / n
        d = jnp.maximum(cnt, 1.0)
        a = jnp.sum(acc * in_bin) / d
        cf = jnp.sum(conf * in_bin) / d
        oe = oe + jnp.where(cnt > 0,
                            jnp.maximum(cf - a, 0.0) * cf * prop, 0.0)
    return oe


if __name__ == "__main__":
    key = jax.random.PRNGKey(0)
    k1, k2, k3, k4 = jax.random.split(key, 4)

    # Small shapes consistent with the module: (batch, num_classes).
    N, C = 70, 8
    logits = jax.random.normal(k1, (N, C), dtype=jnp.float32) * 3.0
    labels = jax.random.randint(k2, (N,), 0, C, dtype=jnp.int32)
    ref = _reference_oe(logits, labels)

    oe_a = overconfidence_error(logits, labels)                    # auto tile
    oe_b = overconfidence_error(logits, labels, tile_rows=16)      # multi-step ragged
    oe_c = overconfidence_error(logits, labels, tile_rows=16,
                                force_shards=2)                    # sharded + ragged
    jax.block_until_ready((oe_a, oe_b, oe_c))
    for oe in (oe_a, oe_b, oe_c):
        assert jnp.allclose(oe[0], ref, atol=2e-5), (oe, ref)

    # Second config: bf16 logits, non-multiple-of-8 batch.
    N2, C2 = 257, 12
    logits2 = (jax.random.normal(k3, (N2, C2), dtype=jnp.float32) * 2.0
               ).astype(jnp.bfloat16)
    labels2 = jax.random.randint(k4, (N2,), 0, C2, dtype=jnp.int32)
    ref2 = _reference_oe(logits2, labels2)
    oe2 = overconfidence_error(logits2, labels2, tile_rows=64)
    jax.block_until_ready(oe2)
    assert jnp.allclose(oe2[0], ref2, atol=2e-5), (oe2, ref2)

    print("KERNEL_OK")
</pallas_src>

<mosaic_0001>
module attributes {stable_mosaic.version = 11 : i64} {
  func.func @_oe_stats_kernel(%arg0: i32, %arg1: i32, %arg2: memref<72x8xf32, #tpu.memory_space<vmem>>, %arg3: memref<72x1xi32, #tpu.memory_space<vmem>>, %arg4: memref<1x3x128xf32, #tpu.memory_space<vmem>>, %arg5: memref<1x128xf32, #tpu.memory_space<vmem>>, %arg6: memref<1x128xf32, #tpu.memory_space<vmem>>, %arg7: memref<1x128xf32, #tpu.memory_space<vmem>>) attributes {dimension_semantics = [#tpu.dimension_semantics<parallel>, #tpu.dimension_semantics<arbitrary>], iteration_bounds = array<i64: 1, 1>, scalar_prefetch = 0 : i64, scratch_operands = 3 : i64, tpu.core_type = #tpu.core_type<tc>, window_params = [{transform_indices = @transform_0, window_bounds = array<i64: 72, 8>}, {transform_indices = @transform_1, window_bounds = array<i64: 72, 1>}, {transform_indices = @transform_2, window_bounds = array<i64: 1, 3, 128>}]} {
    %c0_i32 = arith.constant 0 : i32
    %0 = arith.cmpi eq, %arg1, %c0_i32 : i32
    %1 = arith.extui %0 : i1 to i32
    %c0_i32_0 = arith.constant 0 : i32
    %2 = arith.cmpi ne, %1, %c0_i32_0 : i32
    scf.if %2 {
      %cst_19 = arith.constant 0.000000e+00 : f32
      %51 = vector.broadcast %cst_19 : f32 to vector<1x128xf32>
      %c0_20 = arith.constant 0 : index
      %c0_21 = arith.constant 0 : index
      %52 = vector.load %arg5[%c0_20, %c0_21] : memref<1x128xf32, #tpu.memory_space<vmem>>, vector<1x128xf32>
      tpu.vector_store %arg5[%c0_20, %c0_21], %51 {strides = array<i32>} : memref<1x128xf32, #tpu.memory_space<vmem>>, vector<1x128xf32>,
      %cst_22 = arith.constant 0.000000e+00 : f32
      %53 = vector.broadcast %cst_22 : f32 to vector<1x128xf32>
      %c0_23 = arith.constant 0 : index
      %c0_24 = arith.constant 0 : index
      %54 = vector.load %arg6[%c0_23, %c0_24] : memref<1x128xf32, #tpu.memory_space<vmem>>, vector<1x128xf32>
      tpu.vector_store %arg6[%c0_23, %c0_24], %53 {strides = array<i32>} : memref<1x128xf32, #tpu.memory_space<vmem>>, vector<1x128xf32>,
      %cst_25 = arith.constant 0.000000e+00 : f32
      %55 = vector.broadcast %cst_25 : f32 to vector<1x128xf32>
      %c0_26 = arith.constant 0 : index
      %c0_27 = arith.constant 0 : index
      %56 = vector.load %arg7[%c0_26, %c0_27] : memref<1x128xf32, #tpu.memory_space<vmem>>, vector<1x128xf32>
      tpu.vector_store %arg7[%c0_26, %c0_27], %55 {strides = array<i32>} : memref<1x128xf32, #tpu.memory_space<vmem>>, vector<1x128xf32>,
    } else {
    }
    %c0 = arith.constant 0 : index
    %c0_1 = arith.constant 0 : index
    %3 = vector.load %arg2[%c0, %c0_1] : memref<72x8xf32, #tpu.memory_space<vmem>>, vector<72x8xf32>
    %c0_2 = arith.constant 0 : index
    %c0_3 = arith.constant 0 : index
    %4 = vector.load %arg3[%c0_2, %c0_3] : memref<72x1xi32, #tpu.memory_space<vmem>>, vector<72x1xi32>
    %cst = arith.constant dense<0xFF800000> : vector<72xf32>
    %5 = vector.multi_reduction <maximumf>, %3, %cst [1] : vector<72x8xf32> to vector<72xf32>
    %6 = vector.shape_cast %5 : vector<72xf32> to vector<72x1xf32>
    %7 = vector.broadcast %6 : vector<72x1xf32> to vector<72x8xf32>
    %8 = arith.subf %3, %7 : vector<72x8xf32>
    %9 = math.exp %8 : vector<72x8xf32>
    %cst_4 = arith.constant dense<0.000000e+00> : vector<72xf32>
    %10 = vector.multi_reduction <add>, %9, %cst_4 [1] : vector<72x8xf32> to vector<72xf32>
    %11 = vector.shape_cast %10 : vector<72xf32> to vector<72x1xf32>
    %cst_5 = arith.constant 1.000000e+00 : f32
    %12 = vector.broadcast %cst_5 : f32 to vector<72x1xf32>
    %13 = arith.divf %12, %11 : vector<72x1xf32>
    %14 = tpu.iota {dimensions = array<i32: 1>} : vector<72x8xi32>
    %15 = vector.broadcast %6 : vector<72x1xf32> to vector<72x8xf32>
    %16 = arith.cmpf oeq, %3, %15 : vector<72x8xf32>
    %c8_i32 = arith.constant 8 : i32
    %17 = vector.broadcast %c8_i32 : i32 to vector<72x8xi32>
    %18 = arith.select %16, %14, %17 : vector<72x8xi1>, vector<72x8xi32>
    %cst_6 = arith.constant dense<2147483647> : vector<72xi32>
    %19 = vector.multi_reduction <minsi>, %18, %cst_6 [1] : vector<72x8xi32> to vector<72xi32>
    %20 = vector.shape_cast %19 : vector<72xi32> to vector<72x1xi32>
    %21 = arith.cmpi eq, %20, %4 : vector<72x1xi32>
    %22 = arith.extui %21 : vector<72x1xi1> to vector<72x1xi32>
    %23 = arith.sitofp %22 : vector<72x1xi32> to vector<72x1xf32>
    %24 = tpu.iota {dimensions = array<i32: 1>} : vector<1x128xi32>
    %25 = arith.sitofp %24 : vector<1x128xi32> to vector<1x128xf32>
    %c15_i32 = arith.constant 15 : i32
    %26 = vector.broadcast %c15_i32 : i32 to vector<1x128xi32>
    %27 = arith.cmpi slt, %24, %26 : vector<1x128xi32>
    %cst_7 = arith.constant 1.500000e+01 : f32
    %28 = vector.broadcast %cst_7 : f32 to vector<1x128xf32>
    %29 = arith.divf %25, %28 : vector<1x128xf32>
    %cst_8 = arith.constant 2.000000e+00 : f32
    %30 = vector.broadcast %cst_8 : f32 to vector<1x128xf32>
    %31 = arith.select %27, %29, %30 : vector<1x128xi1>, vector<1x128xf32>
    %c15_i32_9 = arith.constant 15 : i32
    %32 = vector.broadcast %c15_i32_9 : i32 to vector<1x128xi32>
    %33 = arith.cmpi slt, %24, %32 : vector<1x128xi32>
    %cst_10 = arith.constant 1.000000e+00 : f32
    %34 = vector.broadcast %cst_10 : f32 to vector<1x128xf32>
    %35 = arith.addf %25, %34 : vector<1x128xf32>
    %cst_11 = arith.constant 1.500000e+01 : f32
    %36 = vector.broadcast %cst_11 : f32 to vector<1x128xf32>
    %37 = arith.divf %35, %36 : vector<1x128xf32>
    %cst_12 = arith.constant 3.000000e+00 : f32
    %38 = vector.broadcast %cst_12 : f32 to vector<1x128xf32>
    %39 = arith.select %33, %37, %38 : vector<1x128xi1>, vector<1x128xf32>
    %c1_i32 = arith.constant 1 : i32
    %40 = arith.muli %arg0, %c1_i32 : i32
    %41 = arith.addi %40, %arg1 : i32
    %c0_i32_13 = arith.constant 0 : i32
    %42 = arith.cmpi slt, %41, %c0_i32_13 : i32
    %43 = arith.extui %42 : i1 to i32
    %c0_i32_14 = arith.constant 0 : i32
    %44 = arith.cmpi ne, %43, %c0_i32_14 : i32
    scf.if %44 {
      %51 = vector.broadcast %13 : vector<72x1xf32> to vector<72x128xf32>
      %52 = vector.broadcast %39 : vector<1x128xf32> to vector<72x128xf32>
      %53 = arith.cmpf ole, %51, %52 : vector<72x128xf32>
      %54 = arith.extui %53 : vector<72x128xi1> to vector<72x128xi32>
      %55 = arith.sitofp %54 : vector<72x128xi32> to vector<72x128xf32>
      %56 = vector.broadcast %13 : vector<72x1xf32> to vector<72x128xf32>
      %57 = vector.broadcast %31 : vector<1x128xf32> to vector<72x128xf32>
      %58 = arith.cmpf ole, %56, %57 : vector<72x128xf32>
      %59 = arith.extui %58 : vector<72x128xi1> to vector<72x128xi32>
      %60 = arith.sitofp %59 : vector<72x128xi32> to vector<72x128xf32>
      %61 = arith.subf %55, %60 : vector<72x128xf32>
      %c0_19 = arith.constant 0 : index
      %c0_20 = arith.constant 0 : index
      %62 = vector.load %arg5[%c0_19, %c0_20] : memref<1x128xf32, #tpu.memory_space<vmem>>, vector<1x128xf32>
      %cst_21 = arith.constant dense<0.000000e+00> : vector<128xf32>
      %63 = vector.multi_reduction <add>, %61, %cst_21 [0] : vector<72x128xf32> to vector<128xf32>
      %64 = vector.shape_cast %63 : vector<128xf32> to vector<1x128xf32>
      %65 = arith.addf %62, %64 : vector<1x128xf32>
      %c0_22 = arith.constant 0 : index
      %c0_23 = arith.constant 0 : index
      %66 = vector.load %arg5[%c0_22, %c0_23] : memref<1x128xf32, #tpu.memory_space<vmem>>, vector<1x128xf32>
      tpu.vector_store %arg5[%c0_22, %c0_23], %65 {strides = array<i32>} : memref<1x128xf32, #tpu.memory_space<vmem>>, vector<1x128xf32>,
      %c0_24 = arith.constant 0 : index
      %c0_25 = arith.constant 0 : index
      %67 = vector.load %arg6[%c0_24, %c0_25] : memref<1x128xf32, #tpu.memory_space<vmem>>, vector<1x128xf32>
      %68 = vector.broadcast %23 : vector<72x1xf32> to vector<72x128xf32>
      %69 = arith.mulf %61, %68 : vector<72x128xf32>
      %cst_26 = arith.constant dense<0.000000e+00> : vector<128xf32>
      %70 = vector.multi_reduction <add>, %69, %cst_26 [0] : vector<72x128xf32> to vector<128xf32>
      %71 = vector.shape_cast %70 : vector<128xf32> to vector<1x128xf32>
      %72 = arith.addf %67, %71 : vector<1x128xf32>
      %c0_27 = arith.constant 0 : index
      %c0_28 = arith.constant 0 : index
      %73 = vector.load %arg6[%c0_27, %c0_28] : memref<1x128xf32, #tpu.memory_space<vmem>>, vector<1x128xf32>
      tpu.vector_store %arg6[%c0_27, %c0_28], %72 {strides = array<i32>} : memref<1x128xf32, #tpu.memory_space<vmem>>, vector<1x128xf32>,
      %c0_29 = arith.constant 0 : index
      %c0_30 = arith.constant 0 : index
      %74 = vector.load %arg7[%c0_29, %c0_30] : memref<1x128xf32, #tpu.memory_space<vmem>>, vector<1x128xf32>
      %75 = vector.broadcast %13 : vector<72x1xf32> to vector<72x128xf32>
      %76 = arith.mulf %61, %75 : vector<72x128xf32>
      %cst_31 = arith.constant dense<0.000000e+00> : vector<128xf32>
      %77 = vector.multi_reduction <add>, %76, %cst_31 [0] : vector<72x128xf32> to vector<128xf32>
      %78 = vector.shape_cast %77 : vector<128xf32> to vector<1x128xf32>
      %79 = arith.addf %74, %78 : vector<1x128xf32>
      %c0_32 = arith.constant 0 : index
      %c0_33 = arith.constant 0 : index
      %80 = vector.load %arg7[%c0_32, %c0_33] : memref<1x128xf32, #tpu.memory_space<vmem>>, vector<1x128xf32>
      tpu.vector_store %arg7[%c0_32, %c0_33], %79 {strides = array<i32>} : memref<1x128xf32, #tpu.memory_space<vmem>>, vector<1x128xf32>,
    } else {
    }
    %c0_i32_15 = arith.constant 0 : i32
    %45 = arith.cmpi sge, %41, %c0_i32_15 : i32
    %46 = arith.extui %45 : i1 to i32
    %c0_i32_16 = arith.constant 0 : i32
    %47 = arith.cmpi ne, %46, %c0_i32_16 : i32
    scf.if %47 {
      %51 = vector.broadcast %13 : vector<72x1xf32> to vector<72x128xf32>
      %52 = vector.broadcast %39 : vector<1x128xf32> to vector<72x128xf32>
      %53 = arith.cmpf ole, %51, %52 : vector<72x128xf32>
      %54 = arith.extui %53 : vector<72x128xi1> to vector<72x128xi32>
      %55 = arith.sitofp %54 : vector<72x128xi32> to vector<72x128xf32>
      %56 = vector.broadcast %13 : vector<72x1xf32> to vector<72x128xf32>
      %57 = vector.broadcast %31 : vector<1x128xf32> to vector<72x128xf32>
      %58 = arith.cmpf ole, %56, %57 : vector<72x128xf32>
      %59 = arith.extui %58 : vector<72x128xi1> to vector<72x128xi32>
      %60 = arith.sitofp %59 : vector<72x128xi32> to vector<72x128xf32>
      %61 = arith.subf %55, %60 : vector<72x128xf32>
      %c1_i32_19 = arith.constant 1 : i32
      %62 = arith.muli %arg0, %c1_i32_19 : i32
      %63 = arith.addi %62, %arg1 : i32
      %c72_i32 = arith.constant 72 : i32
      %64 = arith.muli %63, %c72_i32 : i32
      %65 = tpu.iota {dimensions = array<i32: 0>} : vector<72x1xi32>
      %66 = vector.broadcast %64 : i32 to vector<72x1xi32>
      %67 = arith.addi %66, %65 : vector<72x1xi32>
      %c70_i32 = arith.constant 70 : i32
      %68 = vector.broadcast %c70_i32 : i32 to vector<72x1xi32>
      %69 = arith.cmpi slt, %67, %68 : vector<72x1xi32>
      %70 = arith.extui %69 : vector<72x1xi1> to vector<72x1xi32>
      %71 = arith.sitofp %70 : vector<72x1xi32> to vector<72x1xf32>
      %72 = vector.broadcast %71 : vector<72x1xf32> to vector<72x128xf32>
      %73 = arith.mulf %61, %72 : vector<72x128xf32>
      %c0_20 = arith.constant 0 : index
      %c0_21 = arith.constant 0 : index
      %74 = vector.load %arg5[%c0_20, %c0_21] : memref<1x128xf32, #tpu.memory_space<vmem>>, vector<1x128xf32>
      %cst_22 = arith.constant dense<0.000000e+00> : vector<128xf32>
      %75 = vector.multi_reduction <add>, %73, %cst_22 [0] : vector<72x128xf32> to vector<128xf32>
      %76 = vector.shape_cast %75 : vector<128xf32> to vector<1x128xf32>
      %77 = arith.addf %74, %76 : vector<1x128xf32>
      %c0_23 = arith.constant 0 : index
      %c0_24 = arith.constant 0 : index
      %78 = vector.load %arg5[%c0_23, %c0_24] : memref<1x128xf32, #tpu.memory_space<vmem>>, vector<1x128xf32>
      tpu.vector_store %arg5[%c0_23, %c0_24], %77 {strides = array<i32>} : memref<1x128xf32, #tpu.memory_space<vmem>>, vector<1x128xf32>,
      %c0_25 = arith.constant 0 : index
      %c0_26 = arith.constant 0 : index
      %79 = vector.load %arg6[%c0_25, %c0_26] : memref<1x128xf32, #tpu.memory_space<vmem>>, vector<1x128xf32>
      %80 = vector.broadcast %23 : vector<72x1xf32> to vector<72x128xf32>
      %81 = arith.mulf %73, %80 : vector<72x128xf32>
      %cst_27 = arith.constant dense<0.000000e+00> : vector<128xf32>
      %82 = vector.multi_reduction <add>, %81, %cst_27 [0] : vector<72x128xf32> to vector<128xf32>
      %83 = vector.shape_cast %82 : vector<128xf32> to vector<1x128xf32>
      %84 = arith.addf %79, %83 : vector<1x128xf32>
      %c0_28 = arith.constant 0 : index
      %c0_29 = arith.constant 0 : index
      %85 = vector.load %arg6[%c0_28, %c0_29] : memref<1x128xf32, #tpu.memory_space<vmem>>, vector<1x128xf32>
      tpu.vector_store %arg6[%c0_28, %c0_29], %84 {strides = array<i32>} : memref<1x128xf32, #tpu.memory_space<vmem>>, vector<1x128xf32>,
      %c0_30 = arith.constant 0 : index
      %c0_31 = arith.constant 0 : index
      %86 = vector.load %arg7[%c0_30, %c0_31] : memref<1x128xf32, #tpu.memory_space<vmem>>, vector<1x128xf32>
      %87 = vector.broadcast %13 : vector<72x1xf32> to vector<72x128xf32>
      %88 = arith.mulf %73, %87 : vector<72x128xf32>
      %cst_32 = arith.constant dense<0.000000e+00> : vector<128xf32>
      %89 = vector.multi_reduction <add>, %88, %cst_32 [0] : vector<72x128xf32> to vector<128xf32>
      %90 = vector.shape_cast %89 : vector<128xf32> to vector<1x128xf32>
      %91 = arith.addf %86, %90 : vector<1x128xf32>
      %c0_33 = arith.constant 0 : index
      %c0_34 = arith.constant 0 : index
      %92 = vector.load %arg7[%c0_33, %c0_34] : memref<1x128xf32, #tpu.memory_space<vmem>>, vector<1x128xf32>
      tpu.vector_store %arg7[%c0_33, %c0_34], %91 {strides = array<i32>} : memref<1x128xf32, #tpu.memory_space<vmem>>, vector<1x128xf32>,
    } else {
    }
    %c0_i32_17 = arith.constant 0 : i32
    %48 = arith.cmpi eq, %arg1, %c0_i32_17 : i32
    %49 = arith.extui %48 : i1 to i32
    %c0_i32_18 = arith.constant 0 : i32
    %50 = arith.cmpi ne, %49, %c0_i32_18 : i32
    scf.if %50 {
      %c0_19 = arith.constant 0 : index
      %c0_20 = arith.constant 0 : index
      %51 = vector.load %arg5[%c0_19, %c0_20] : memref<1x128xf32, #tpu.memory_space<vmem>>, vector<1x128xf32>
      %c0_21 = arith.constant 0 : index
      %c0_22 = arith.constant 0 : index
      %c0_23 = arith.constant 0 : index
      %52 = vector.load %arg4[%c0_21, %c0_22, %c0_23] : memref<1x3x128xf32, #tpu.memory_space<vmem>>, vector<1x1x128xf32>
      %53 = vector.shape_cast %52 : vector<1x1x128xf32> to vector<1x128xf32>
      %54 = vector.shape_cast %51 : vector<1x128xf32> to vector<1x1x128xf32>
      tpu.vector_store %arg4[%c0_21, %c0_22, %c0_23], %54 {strides = array<i32>} : memref<1x3x128xf32, #tpu.memory_space<vmem>>, vector<1x1x128xf32>,
      %c0_24 = arith.constant 0 : index
      %c0_25 = arith.constant 0 : index
      %55 = vector.load %arg6[%c0_24, %c0_25] : memref<1x128xf32, #tpu.memory_space<vmem>>, vector<1x128xf32>
      %c0_26 = arith.constant 0 : index
      %c1 = arith.constant 1 : index
      %c0_27 = arith.constant 0 : index
      %56 = vector.load %arg4[%c0_26, %c1, %c0_27] : memref<1x3x128xf32, #tpu.memory_space<vmem>>, vector<1x1x128xf32>
      %57 = vector.shape_cast %56 : vector<1x1x128xf32> to vector<1x128xf32>
      %58 = vector.shape_cast %55 : vector<1x128xf32> to vector<1x1x128xf32>
      tpu.vector_store %arg4[%c0_26, %c1, %c0_27], %58 {strides = array<i32>} : memref<1x3x128xf32, #tpu.memory_space<vmem>>, vector<1x1x128xf32>,
      %c0_28 = arith.constant 0 : index
      %c0_29 = arith.constant 0 : index
      %59 = vector.load %arg7[%c0_28, %c0_29] : memref<1x128xf32, #tpu.memory_space<vmem>>, vector<1x128xf32>
      %c0_30 = arith.constant 0 : index
      %c2 = arith.constant 2 : index
      %c0_31 = arith.constant 0 : index
      %60 = vector.load %arg4[%c0_30, %c2, %c0_31] : memref<1x3x128xf32, #tpu.memory_space<vmem>>, vector<1x1x128xf32>
      %61 = vector.shape_cast %60 : vector<1x1x128xf32> to vector<1x128xf32>
      %62 = vector.shape_cast %59 : vector<1x128xf32> to vector<1x1x128xf32>
      tpu.vector_store %arg4[%c0_30, %c2, %c0_31], %62 {strides = array<i32>} : memref<1x3x128xf32, #tpu.memory_space<vmem>>, vector<1x1x128xf32>,
    } else {
    }
    return
  }
  func.func @transform_0(%arg0: i32, %arg1: i32) -> (i32, i32) {
    %c1_i32 = arith.constant 1 : i32
    %0 = arith.muli %arg0, %c1_i32 : i32
    %1 = arith.addi %0, %arg1 : i32
    %c0_i32 = arith.constant 0 : i32
    %c0_i32_0 = arith.constant 0 : i32
    return %1, %c0_i32 : i32, i32
  }
  func.func @transform_1(%arg0: i32, %arg1: i32) -> (i32, i32) {
    %c1_i32 = arith.constant 1 : i32
    %0 = arith.muli %arg0, %c1_i32 : i32
    %1 = arith.addi %0, %arg1 : i32
    %c0_i32 = arith.constant 0 : i32
    %c0_i32_0 = arith.constant 0 : i32
    return %1, %c0_i32 : i32, i32
  }
  func.func @transform_2(%arg0: i32, %arg1: i32) -> (i32, i32, i32) {
    %c0_i32 = arith.constant 0 : i32
    %c0_i32_0 = arith.constant 0 : i32
    %c0_i32_1 = arith.constant 0 : i32
    return %arg0, %c0_i32, %c0_i32_0 : i32, i32, i32
  }
}

</mosaic_0001>

<bundles_post_ra>
// kernel: tpu_custom_call.1
= control target key start
LH: loop header
LB: loop body
LE: loop exit
PB: predicated region body
PF: predicated region fallthrough
CT: control target
= control target key end

     0   :  { %vm80_vm0 = vcmask 64512   ;;  %v180_v18 = vlaneseq  ;;  %s1277_s0 = inlined_call_operand.vmem [shape: f32[72,8], index: 0, kind: input, shape index: {}]   ;;  %s1278_s1 = inlined_call_operand.vmem [shape: s32[72,1], index: 1, kind: input, shape index: {}]   ;;  %s1279_s2 = inlined_call_operand.vmem [shape: f32[1,3,128], index: 2, kind: output, shape index: {}]  }
   0x1   :  { %v926_v0 = vld [vmem:[%s1277_s0] sm:$0xff]  ;;  %v931_v1 = vld [vmem:[%s1277_s0 + $0x10] sm:$0xff]  ;;  %v936_v2 = vld [vmem:[%s1277_s0 + $0x8] sm:$0xff] }
   0x2   :  { %v81_v3 = vsel %vm80_vm0, %v926_v0, -inf  ;;  %v87_v4 = vsel %vm80_vm0, %v931_v1, -inf  ;;  %v945_v5 = vld [vmem:[%s1277_s0 + $0x18] sm:$0xff]  ;;  %v84_v6 = vsel %vm80_vm0, %v936_v2, -inf  ;;  %v954_v8 = vld [vmem:[%s1277_s0 + $0x20] sm:$0xff]  ;;  %v959_v9 = vld [vmem:[%s1277_s0 + $0x28] sm:$0xff] }
   0x3   :  { %82 = vmax.xlane.f32.xlu0 %v81_v3  ;;  %88 = vmax.xlane.f32.xlu1 %v87_v4  ;;  %v90_v7 = vsel %vm80_vm0, %v945_v5, -inf  ;;  %v93_v10 = vsel %vm80_vm0, %v954_v8, -inf  ;;  %v96_v11 = vsel %vm80_vm0, %v959_v9, -inf  ;;  %v968_v12 = vld [vmem:[%s1277_s0 + $0x30] sm:$0xff]  ;;  %v973_v13 = vld [vmem:[%s1277_s0 + $0x38] sm:$0xff]  ;;  %v982_v16 = vld [vmem:[%s1277_s0 + $0x40] sm:$0xff] }
   0x4   :  { %v99_v14 = vsel %vm80_vm0, %v968_v12, -inf  ;;  %v102_v15 = vsel %vm80_vm0, %v973_v13, -inf  ;;  %v105_v17 = vsel %vm80_vm0, %v982_v16, -inf  ;;  %v987_v19 = vand.u32 127, %v180_v18 }
   0x7   :  { %85 = vmax.xlane.f32.xlu0 %v84_v6  ;;  %91 = vmax.xlane.f32.xlu1 %v90_v7 }
   0xb   :  { %94 = vmax.xlane.f32.xlu0 %v93_v10  ;;  %97 = vmax.xlane.f32.xlu1 %v96_v11 }
   0xf   :  { %100 = vmax.xlane.f32.xlu0 %v99_v14  ;;  %103 = vmax.xlane.f32.xlu1 %v102_v15 }
  0x13   :  { %106 = vmax.xlane.f32.xlu0 %v105_v17 }
  0x90   :  { %v989_v20 = vpop.xlane.xlu0 %82  ;;  %v991_v21 = vpop.xlane.xlu1 %88 }
  0x91   :  { %vm182_vm1 = vcmp.eq.f32.partialorder %v926_v0, %v989_v20  ;;  %vm184_vm2 = vcmp.eq.f32.partialorder %v931_v1, %v991_v21  ;;  %v108_v11 = vsub.f32 %v926_v0, %v989_v20 }
  0x92   :  { %v191_v22 = vsel %vm182_vm1, %v987_v19, 8  ;;  %v193_v23 = vsel %vm184_vm2, %v987_v19, 8 }
  0x93   :  { %v200_v24 = vsel %vm80_vm0, %v191_v22, 2147483647  ;;  %v1005_v28 = vsel %vm80_vm0, %v193_v23, 2147483647 }
  0x94   :  { %v1000_v25 = vpop.xlane.xlu0 %85  ;;  %v1002_v26 = vpop.xlane.xlu1 %91  ;;  %v202_v27 = vshra.s32 %v200_v24, 16  ;;  %v232_v32 = vshra.s32 %v1005_v28, 16  ;;  %v201_v4 = vand.u32 65535, %v200_v24  ;;  %v231_v10 = vand.u32 65535, %v1005_v28 }
  0x95   :  { %vm183_vm3 = vcmp.eq.f32.partialorder %v936_v2, %v1000_v25  ;;  %vm185_vm4 = vcmp.eq.f32.partialorder %v945_v5, %v1002_v26  ;;  %v109_v17 = vsub.f32 %v936_v2, %v1000_v25  ;;  %v117_v24 = vmul.f32 1.442695, %v108_v11 }
  0x96   :  { %v192_v29 = vsel %vm183_vm3, %v987_v19, 8  ;;  %v204_v30 = vcvt.s32.f32 %v202_v27  ;;  %v194_v31 = vsel %vm185_vm4, %v987_v19, 8  ;;  %v234_v38 = vcvt.s32.f32 %v232_v32 }
  0x97   :  { %v215_v35 = vsel %vm80_vm0, %v192_v29, 2147483647  ;;  %v1022_v36 = vsel %vm80_vm0, %v194_v31, 2147483647  ;;  %v203_v7 = vcvt.s32.f32 %v201_v4  ;;  %v233_v23 = vcvt.s32.f32 %v231_v10 }
  0x98   :  { %205 = vmin.xlane.f32.xlu1 %v204_v30  ;;  %v1014_v33 = vpop.xlane.xlu0 %94  ;;  %v1016_v34 = vpop.xlane.xlu1 %97  ;;  %v217_v40 = vshra.s32 %v215_v35, 16  ;;  %v247_v43 = vshra.s32 %v1022_v36, 16  ;;  %v216_v15 = vand.u32 65535, %v215_v35  ;;  %v110_v27 = vsub.f32 %v931_v1, %v991_v21 }
  0x99   :  { %vm186_vm5 = vcmp.eq.f32.partialorder %v954_v8, %v1014_v33  ;;  %vm187_vm6 = vcmp.eq.f32.partialorder %v959_v9, %v1016_v34  ;;  %v119_v31 = vmul.f32 1.442695, %v109_v17  ;;  %v111_v2 = vsub.f32 %v945_v5, %v1002_v26 }
  0x9a   :  { %v195_v37 = vsel %vm186_vm5, %v987_v19, 8  ;;  %v196_v39 = vsel %vm187_vm6, %v987_v19, 8  ;;  %v219_v45 = vcvt.s32.f32 %v217_v40  ;;  %v1044_v48 = vcvt.s32.f32 %v247_v43 }
  0x9b   :  { %v1034_v44 = vsel %vm80_vm0, %v195_v37, 2147483647  ;;  %v1039_v46 = vsel %vm80_vm0, %v196_v39, 2147483647  ;;  %v218_v0 = vcvt.s32.f32 %v216_v15  ;;  %870 = vpow2.f32 %v117_v24 }
  0x9c   :  { %235 = vmin.xlane.f32.xlu1 %v234_v38  ;;  %v1028_v41 = vpop.xlane.xlu0 %100  ;;  %v1030_v42 = vpop.xlane.xlu1 %103  ;;  %220 = vmin.xlane.f32.xlu0 %v219_v45  ;;  %v262_v49 = vshra.s32 %v1034_v44, 16  ;;  %v277_v52 = vshra.s32 %v1039_v46, 16  ;;  %v261_v20 = vand.u32 65535, %v1034_v44  ;;  %v121_v32 = vmul.f32 1.442695, %v110_v27 }
  0x9d   :  { %vm188_vm7 = vcmp.eq.f32.partialorder %v968_v12, %v1028_v41  ;;  %vm189_vm8 = vcmp.eq.f32.partialorder %v973_v13, %v1030_v42  ;;  %v112_v1 = vsub.f32 %v954_v8, %v1014_v33  ;;  %v113_v21 = vsub.f32 %v959_v9, %v1016_v34 }
  0x9e   :  { %v197_v47 = vsel %vm188_vm7, %v987_v19, 8  ;;  %v198_v50 = vsel %vm189_vm8, %v987_v19, 8  ;;  %v264_v54 = vcvt.s32.f32 %v262_v49  ;;  %v1059_v57 = vcvt.s32.f32 %v277_v52 }
  0x9f   :  { %v1052_v53 = vsel %vm80_vm0, %v197_v47, 2147483647  ;;  %v1062_v58 = vsel %vm80_vm0, %v198_v50, 2147483647  ;;  %v276_v26 = vand.u32 65535, %v1039_v46  ;;  %872 = vpow2.f32 %v119_v31 }
  0xa0   :  { %v1048_v51 = vpop.xlane.xlu0 %106  ;;  %v292_v56 = vshra.s32 %v1052_v53, 16  ;;  %250 = vmin.xlane.f32.xlu0 %v1044_v48  ;;  %265 = vmin.xlane.f32.xlu1 %v264_v54  ;;  %v307_v61 = vshra.s32 %v1062_v58, 16  ;;  %v291_v5 = vand.u32 65535, %v1052_v53  ;;  %v123_v39 = vmul.f32 1.442695, %v111_v2 }
  0xa1   :  { %vm190_vm9 = vcmp.eq.f32.partialorder %v982_v16, %v1048_v51  ;;  %874 = vpow2.f32 %v121_v32  ;;  %v125_v33 = vmul.f32 1.442695, %v112_v1  ;;  %v127_v34 = vmul.f32 1.442695, %v113_v21 }
  0xa2   :  { %v199_v55 = vsel %vm190_vm9, %v987_v19, 8  ;;  %v1067_v60 = vcvt.s32.f32 %v292_v56  ;;  %v1073_v63 = vcvt.s32.f32 %v307_v61  ;;  %v114_v40 = vsub.f32 %v968_v12, %v1028_v41 }
  0xa3   :  { %v1065_v59 = vsel %vm80_vm0, %v199_v55, 2147483647  ;;  %v278_v46 = vcvt.s32.f32 %v276_v26  ;;  %876 = vpow2.f32 %v123_v39  ;;  %v115_v49 = vsub.f32 %v973_v13, %v1030_v42 }
  0xa4   :  { %v322_v62 = vshra.s32 %v1065_v59, 16  ;;  %280 = vmin.xlane.f32.xlu0 %v1059_v57  ;;  %295 = vmin.xlane.f32.xlu1 %v1067_v60  ;;  %v321_v47 = vand.u32 65535, %v1065_v59  ;;  %878 = vpow2.f32 %v125_v33  ;;  %v129_v50 = vmul.f32 1.442695, %v114_v40  ;;  %v72_v33 = vld [vmem:[%s1278_s1 + $0x8] sm:$0xff] }
  0xa5   :  { %880 = vpow2.f32 %v127_v34  ;;  %v871_v13 = vpop.eup %870  ;;  %v131_v42 = vmul.f32 1.442695, %v115_v49  ;;  %v116_v56 = vsub.f32 %v982_v16, %v1048_v51  ;;  %v906_v10 = vmov 0  }
  0xa6   :  { %v1075_v3 = vcvt.s32.f32 %v322_v62  ;;  %882 = vpow2.f32 %v129_v50  ;;  %v135_v4 = vsel %vm80_vm0, %v871_v13, 0.0  ;;  %869 = vset.pattern.permute.xlu1 %v906_v10  ;;  %v907_v11 = vmov 0.0   ;;  %863 = vset.pattern.permute.xlu0 %v906_v10  ;;  %v74_v50 = vld [vmem:[%s1278_s1 + $0x18] sm:$0xff] }
  0xa7   :  { %884 = vpow2.f32 %v131_v42  ;;  %v133_v61 = vmul.f32 1.442695, %v116_v56  ;;  %59 = vst [vmem:[#allocation2] sm:$0x1] %v907_v11  ;;  %60 = vst [vmem:[#allocation3] sm:$0x1] %v907_v11 }
  0xa8   :  { %310 = vmin.xlane.f32.xlu0 %v1073_v63  ;;  %325 = vmin.xlane.f32.xlu1 %v1075_v3  ;;  %61 = vst [vmem:[#allocation4] sm:$0x1] %v907_v11 }
  0xa9   :  { %v873_v59 = vpop.eup %872  ;;  %886 = vpow2.f32 %v133_v61 }
  0xaa   :  { %v138_v62 = vsel %vm80_vm0, %v873_v59, 0.0 }
 0x125   :  { %v1079_v6 = vpop.xlane.xlu1 %205 }
 0x126   :  { %vm207_vm10 = vcmp.eq.f32.partialorder %v204_v30, %v1079_v6  ;;  %v246_v30 = vand.u32 65535, %v1022_v36  ;;  %v263_v36 = vcvt.s32.f32 %v261_v20  ;;  %v212_v20 = vcvt.f32.s32 %v1079_v6  ;;  %v71_v6 = vld [vmem:[%s1278_s1] sm:$0xff] }
 0x127   :  { %v208_v14 = vsel %vm207_vm10, %v203_v7, inf  ;;  %vm363_vm10 = vcmp.lt.s32.totalorder %v987_v19, 15 }
 0x128   :  { %209 = vmin.xlane.f32.xlu0 %v208_v14 }
 0x129   :  { %v1087_v22 = vpop.xlane.xlu1 %235  ;;  %v1092_v29 = vpop.xlane.xlu0 %220 }
 0x12a   :  { %vm237_vm11 = vcmp.eq.f32.partialorder %v234_v38, %v1087_v22  ;;  %vm222_vm12 = vcmp.eq.f32.partialorder %v219_v45, %v1092_v29  ;;  %v248_v38 = vcvt.s32.f32 %v246_v30  ;;  %v293_v45 = vcvt.s32.f32 %v291_v5  ;;  %v73_v5 = vld [vmem:[%s1278_s1 + $0x10] sm:$0xff] }
 0x12b   :  { %v238_v28 = vsel %vm237_vm11, %v233_v23, inf  ;;  %v223_v25 = vsel %vm222_vm12, %v218_v0, inf  ;;  %v242_v31 = vcvt.f32.s32 %v1087_v22  ;;  %v227_v32 = vcvt.f32.s32 %v1092_v29 }
 0x12c   :  { %239 = vmin.xlane.f32.xlu0 %v238_v28  ;;  %224 = vmin.xlane.f32.xlu1 %v223_v25  ;;  %v213_v25 = vshll.u32 %v212_v20, 16 }
 0x12d   :  { %v1103_v35 = vpop.xlane.xlu1 %265  ;;  %v1105_v37 = vpop.xlane.xlu0 %250  ;;  %v243_v21 = vshll.u32 %v242_v31, 16 }
 0x12e   :  { %vm267_vm13 = vcmp.eq.f32.partialorder %v264_v54, %v1103_v35  ;;  %vm252_vm14 = vcmp.eq.f32.partialorder %v1044_v48, %v1105_v37  ;;  %v306_v48 = vand.u32 65535, %v1062_v58  ;;  %v323_v54 = vcvt.s32.f32 %v321_v47 }
 0x12f   :  { %v268_v8 = vsel %vm267_vm13, %v263_v36, inf  ;;  %v253_v9 = vsel %vm252_vm14, %v248_v38, inf  ;;  %v272_v26 = vcvt.f32.s32 %v1103_v35  ;;  %v257_v39 = vcvt.f32.s32 %v1105_v37 }
 0x130   :  { %269 = vmin.xlane.f32.xlu0 %v268_v8  ;;  %254 = vmin.xlane.f32.xlu1 %v253_v9  ;;  %v308_v55 = vcvt.s32.f32 %v306_v48  ;;  %v228_v9 = vshll.u32 %v227_v32, 16 }
 0x131   :  { %v1114_v43 = vpop.xlane.xlu1 %295  ;;  %v1116_v44 = vpop.xlane.xlu0 %280  ;;  %v273_v35 = vshll.u32 %v272_v26, 16 }
 0x132   :  { %vm297_vm15 = vcmp.eq.f32.partialorder %v1067_v60, %v1114_v43  ;;  %vm282_vm1 = vcmp.eq.f32.partialorder %v1059_v57, %v1116_v44  ;;  %v875_v60 = vpop.eup %874  ;;  %v287_v47 = vcvt.f32.s32 %v1116_v44  ;;  %v75_v44 = vld [vmem:[%s1278_s1 + $0x20] sm:$0xff] }
 0x133   :  { %v298_v12 = vsel %vm297_vm15, %v293_v45, inf  ;;  %v283_v41 = vsel %vm282_vm1, %v278_v46, inf  ;;  %v877_v16 = vpop.eup %876  ;;  %v141_v7 = vsel %vm80_vm0, %v875_v60, 0.0  ;;  %v258_v45 = vshll.u32 %v257_v39, 16 }
 0x134   :  { %299 = vmin.xlane.f32.xlu0 %v298_v12  ;;  %284 = vmin.xlane.f32.xlu1 %v283_v41  ;;  %v879_v51 = vpop.eup %878 }
 0x135   :  { %v1126_v52 = vpop.xlane.xlu1 %325  ;;  %v1128_v53 = vpop.xlane.xlu0 %310  ;;  %v147_v17 = vsel %vm80_vm0, %v879_v51, 0.0  ;;  %v76_v51 = vld [vmem:[%s1278_s1 + $0x28] sm:$0xff] }
 0x136   :  { %vm327_vm2 = vcmp.eq.f32.partialorder %v1075_v3, %v1126_v52  ;;  %vm312_vm3 = vcmp.eq.f32.partialorder %v1073_v63, %v1128_v53  ;;  %v881_v3 = vpop.eup %880  ;;  %v144_v63 = vsel %vm80_vm0, %v877_v16, 0.0  ;;  %v332_v10 = vcvt.f32.s32 %v1126_v52 }
 0x137   :  { %v328_v57 = vsel %vm327_vm2, %v323_v54, inf  ;;  %v313_v58 = vsel %vm312_vm3, %v308_v55, inf  ;;  %v883_v14 = vpop.eup %882  ;;  %v150_v15 = vsel %vm80_vm0, %v881_v3, 0.0 }
 0x138   :  { %329 = vmin.xlane.f32.xlu0 %v328_v57  ;;  %314 = vmin.xlane.f32.xlu1 %v313_v58  ;;  %v885_v23 = vpop.eup %884  ;;  %v153_v27 = vsel %vm80_vm0, %v883_v14, 0.0  ;;  %v302_v57 = vcvt.f32.s32 %v1114_v43  ;;  %v288_v58 = vshll.u32 %v287_v47, 16  ;;  %v362_v43 = vcvt.s32.f32 %v987_v19 }
 0x139   :  { %v156_v24 = vsel %vm80_vm0, %v885_v23, 0.0  ;;  %v887_v28 = vpop.eup %886  ;;  %v333_v20 = vshll.u32 %v332_v10, 16  ;;  %v621_v47 = vshrl.u32 %v180_v18, 7 }
 0x13a   :  { %v159_v0 = vsel %vm80_vm0, %v887_v28, 0.0  ;;  %v303_v3 = vshll.u32 %v302_v57, 16  ;;  %v365_v32 = vmul.f32 0.06666667, %v362_v43 }
 0x13c   :  { %139 = vadd.xlane.f32.xlu0 %v138_v62  ;;  %136 = vadd.xlane.f32.xlu1 %v135_v4  ;;  %v1193_v26 = vsel %vm363_vm10, %v365_v32, 2.0 }
 0x140   :  { %145 = vadd.xlane.f32.xlu0 %v144_v63  ;;  %142 = vadd.xlane.f32.xlu1 %v141_v7  ;;  %v317_v63 = vcvt.f32.s32 %v1128_v53  ;;  %v367_v53 = vadd.f32 1.0, %v362_v43 }
 0x144   :  { %151 = vadd.xlane.f32.xlu0 %v150_v15  ;;  %148 = vadd.xlane.f32.xlu1 %v147_v17 }
 0x148   :  { %157 = vadd.xlane.f32.xlu0 %v156_v24  ;;  %154 = vadd.xlane.f32.xlu1 %v153_v27  ;;  %v77_v24 = vld [vmem:[%s1278_s1 + $0x30] sm:$0xff]  ;;  %v318_v27 = vshll.u32 %v317_v63, 16 }
 0x14c   :  { %160 = vadd.xlane.f32.xlu1 %v159_v0 }
 0x1b5   :  { %v210_v30 = vpop.xlane.xlu0 %209 }
 0x1b6   :  { %v211_v2 = vcvt.f32.s32 %v210_v30 }
 0x1b8   :  { %v214_v38 = vadd.s32 %v213_v25, %v211_v2  ;;  %v78_v2 = vld [vmem:[%s1278_s1 + $0x38] sm:$0xff] }
 0x1b9   :  { %v240_v1 = vpop.xlane.xlu0 %239  ;;  %v225_v22 = vpop.xlane.xlu1 %224 }
 0x1ba   :  { %v241_v36 = vcvt.f32.s32 %v240_v1  ;;  %v226_v29 = vcvt.f32.s32 %v225_v22  ;;  %vm335_vm4 = vcmp.eq.s32.totalorder %v214_v38, %v71_v6  ;;  %v368_v1 = vmul.f32 0.06666667, %v367_v53 }
 0x1bb   :  { %v815_v12 = vsel %vm335_vm4, 1.0, %v907_v11 }
 0x1bc   :  { %v244_v8 = vadd.s32 %v243_v21, %v241_v36  ;;  %v229_v34 = vadd.s32 %v228_v9, %v226_v29  ;;  %v79_v36 = vld [vmem:[%s1278_s1 + $0x40] sm:$0xff]  ;;  %v1195_v39 = vsel %vm363_vm10, %v368_v1, 3.0 }
 0x1bd   :  { %v255_v37 = vpop.xlane.xlu1 %254  ;;  %v270_v46 = vpop.xlane.xlu0 %269 }
 0x1be   :  { %vm337_vm0 = vcmp.eq.s32.totalorder %v244_v8, %v73_v5  ;;  %vm336_vm5 = vcmp.eq.s32.totalorder %v229_v34, %v72_v33  ;;  %v256_v48 = vcvt.f32.s32 %v255_v37  ;;  %v271_v49 = vcvt.f32.s32 %v270_v46 }
 0x1bf   :  { %v817_v40 = vsel %vm337_vm0, 1.0, %v907_v11  ;;  %v816_v41 = vsel %vm336_vm5, 1.0, %v907_v11 }
 0x1c0   :  { %706 = vperm.xlu1 %869, %v817_v40   ;;  %v259_v54 = vadd.s32 %v258_v45, %v256_v48  ;;  %v274_v55 = vadd.s32 %v273_v35, %v271_v49  ;;  %v864_v13 = vpack.i.bf16 %v816_v41, %v815_v12 }
 0x1c1   :  { %v285_v42 = vpop.xlane.xlu1 %284  ;;  %v300_v56 = vpop.xlane.xlu0 %299 }
 0x1c2   :  { %v286_v59 = vcvt.f32.s32 %v285_v42  ;;  %865 = vperm.xlu0 %863, %v864_v13   ;;  %vm338_vm6 = vcmp.eq.s32.totalorder %v259_v54, %v74_v50  ;;  %v301_v62 = vcvt.f32.s32 %v300_v56  ;;  %vm339_vm7 = vcmp.eq.s32.totalorder %v274_v55, %v75_v44 }
 0x1c3   :  { %v818_v60 = vsel %vm338_vm6, 1.0, %v907_v11  ;;  %v819_v7 = vsel %vm339_vm7, 1.0, %v907_v11  ;;  %v629_v56 = vadd.s32 64, %v621_v47 }
 0x1c4   :  { %v289_v61 = vadd.s32 %v288_v58, %v286_v59  ;;  %711 = vperm.xlu1 %869, %v818_v60   ;;  %v304_v14 = vadd.s32 %v303_v3, %v301_v62 }
 0x1c5   :  { %v315_v4 = vpop.xlane.xlu1 %314  ;;  %v330_v16 = vpop.xlane.xlu0 %329 }
 0x1c6   :  { %v316_v15 = vcvt.f32.s32 %v315_v4  ;;  %vm340_vm8 = vcmp.eq.s32.totalorder %v289_v61, %v76_v51  ;;  %v331_v28 = vcvt.f32.s32 %v330_v16  ;;  %vm341_vm9 = vcmp.eq.s32.totalorder %v304_v14, %v77_v24 }
 0x1c7   :  { %v820_v0 = vsel %vm340_vm8, 1.0, %v907_v11  ;;  %v821_v21 = vsel %vm341_vm9, 1.0, %v907_v11 }
 0x1c8   :  { %716 = vperm.xlu1 %869, %v819_v7   ;;  %v319_v30 = vadd.s32 %v318_v27, %v316_v15  ;;  %v334_v25 = vadd.s32 %v333_v20, %v331_v28 }
 0x1c9   :  { %v137_v17 = vpop.xlane.xlu1 %136  ;;  %v140_v23 = vpop.xlane.xlu0 %139 }
 0x1ca   :  { %888 = vrcp.f32 %v137_v17  ;;  %vm342_vm11 = vcmp.eq.s32.totalorder %v319_v30, %v78_v2  ;;  %vm343_vm12 = vcmp.eq.s32.totalorder %v334_v25, %v79_v36 }
 0x1cb   :  { %890 = vrcp.f32 %v140_v23  ;;  %v822_v6 = vsel %vm342_vm11, 1.0, %v907_v11  ;;  %v823_v19 = vsel %vm343_vm12, 1.0, %v907_v11  ;;  %vm648_vm11 = vcmp.lt.s32.totalorder %v629_v56, 70 }
 0x1cc   :  { %721 = vperm.xlu1 %869, %v820_v0  }
 0x1cd   :  { %v143_v52 = vpop.xlane.xlu1 %142  ;;  %v146_v31 = vpop.xlane.xlu0 %145 }
 0x1ce   :  { %892 = vrcp.f32 %v143_v52 }
 0x1cf   :  { %894 = vrcp.f32 %v146_v31 }
 0x1d0   :  { %726 = vperm.xlu1 %869, %v821_v21  }
 0x1d1   :  { %v149_v38 = vpop.xlane.xlu1 %148  ;;  %v152_v5 = vpop.xlane.xlu0 %151 }
 0x1d2   :  { %896 = vrcp.f32 %v149_v38 }
 0x1d3   :  { %898 = vrcp.f32 %v152_v5  ;;  %v860_v5 = vsel %vm648_vm11, 1.0, %v907_v11 }
 0x1d4   :  { %v889_v22 = vpop.eup %888  ;;  %731 = vperm.xlu1 %869, %v822_v6  }
 0x1d5   :  { %v891_v8 = vpop.eup %890  ;;  %v155_v9 = vpop.xlane.xlu1 %154  ;;  %vm556_vm13 = vcmp.le.f32.partialorder %v889_v22, %v1195_v39  ;;  %vm583_vm14 = vcmp.le.f32.partialorder %v889_v22, %v1193_v26 }
 0x1d6   :  { %v158_v29 = vpop.xlane.xlu0 %157  ;;  %900 = vrcp.f32 %v155_v9  ;;  %vm557_vm15 = vcmp.le.f32.partialorder %v891_v8, %v1195_v39  ;;  %v842_v33 = vsel %vm556_vm13, 1.0, %v907_v11  ;;  %vm584_vm1 = vcmp.le.f32.partialorder %v891_v8, %v1193_v26 }
 0x1d7   :  { %902 = vrcp.f32 %v158_v29  ;;  %v843_v34 = vsel %vm557_vm15, 1.0, %v907_v11  ;;  %v851_v40 = vsel %vm583_vm14, 1.0, %v907_v11  ;;  %v852_v35 = vsel %vm584_vm1, 1.0, %v907_v11 }
 0x1d8   :  { %v893_v45 = vpop.eup %892  ;;  %736 = vperm.xlu1 %869, %v823_v19   ;;  %v1207_v37 = vsub.f32 %v842_v33, %v851_v40  ;;  %v1209_v46 = vsub.f32 %v843_v34, %v852_v35 }
 0x1d9   :  { %v895_v48 = vpop.eup %894  ;;  %v161_v49 = vpop.xlane.xlu1 %160  ;;  %vm558_vm2 = vcmp.le.f32.partialorder %v893_v45, %v1195_v39  ;;  %vm585_vm3 = vcmp.le.f32.partialorder %v893_v45, %v1193_v26 }
 0x1da   :  { %904 = vrcp.f32 %v161_v49  ;;  %v844_v12 = vsel %vm558_vm2, 1.0, %v907_v11  ;;  %v853_v41 = vsel %vm585_vm3, 1.0, %v907_v11  ;;  %v677_v50 = vadd.f32 %v1209_v46, %v1207_v37 }
 0x1db   :  { %v1218_v54 = vsub.f32 %v844_v12, %v853_v41  ;;  %v765_v55 = vmul.f32 %v889_v22, %v1207_v37  ;;  %v766_v18 = vmul.f32 %v891_v8, %v1209_v46  ;;  %vm559_vm0 = vcmp.le.f32.partialorder %v895_v48, %v1195_v39 }
 0x1dc   :  { %v897_v13 = vpop.eup %896  ;;  %v845_v42 = vsel %vm559_vm0, 1.0, %v907_v11  ;;  %vm586_vm4 = vcmp.le.f32.partialorder %v895_v48, %v1193_v26 }
 0x1dd   :  { %v899_v44 = vpop.eup %898  ;;  %v767_v57 = vmul.f32 %v893_v45, %v1218_v54  ;;  %v774_v58 = vadd.f32 %v766_v18, %v765_v55  ;;  %v854_v59 = vsel %vm586_vm4, 1.0, %v907_v11  ;;  %v678_v60 = vadd.f32 %v677_v50, %v1218_v54  ;;  %v676_v50 = vld [vmem:[#allocation2] sm:$0x1]  ;;  %v764_v18 = vld [vmem:[#allocation4] sm:$0x1] }
 0x1de   :  { %v1228_v61 = vsub.f32 %v845_v42, %v854_v59  ;;  %vm560_vm5 = vcmp.le.f32.partialorder %v897_v13, %v1195_v39  ;;  %vm587_vm6 = vcmp.le.f32.partialorder %v897_v13, %v1193_v26  ;;  %vm561_vm7 = vcmp.le.f32.partialorder %v899_v44, %v1195_v39 }
 0x1df   :  { %v775_v62 = vadd.f32 %v774_v58, %v767_v57  ;;  %v846_v4 = vsel %vm560_vm5, 1.0, %v907_v11  ;;  %v855_v16 = vsel %vm587_vm6, 1.0, %v907_v11  ;;  %v847_v51 = vsel %vm561_vm7, 1.0, %v907_v11 }
 0x1e0   :  { %v901_v3 = vpop.eup %900  ;;  %v679_v63 = vadd.f32 %v678_v60, %v1228_v61  ;;  %v768_v43 = vmul.f32 %v895_v48, %v1228_v61  ;;  %v1238_v7 = vsub.f32 %v846_v4, %v855_v16  ;;  %vm588_vm8 = vcmp.le.f32.partialorder %v899_v44, %v1193_v26 }
 0x1e1   :  { %v903_v10 = vpop.eup %902  ;;  %v856_v14 = vsel %vm588_vm8, 1.0, %v907_v11  ;;  %vm562_vm9 = vcmp.le.f32.partialorder %v901_v3, %v1195_v39  ;;  %vm589_vm10 = vcmp.le.f32.partialorder %v901_v3, %v1193_v26 }
 0x1e2   :  { %v776_v15 = vadd.f32 %v775_v62, %v768_v43  ;;  %v769_v17 = vmul.f32 %v897_v13, %v1238_v7  ;;  %v680_v23 = vadd.f32 %v679_v63, %v1238_v7  ;;  %v1246_v24 = vsub.f32 %v847_v51, %v856_v14 }
 0x1e3   :  { %v848_v27 = vsel %vm562_vm9, 1.0, %v907_v11  ;;  %v857_v28 = vsel %vm589_vm10, 1.0, %v907_v11  ;;  %vm563_vm12 = vcmp.le.f32.partialorder %v903_v10, %v1195_v39  ;;  %vm590_vm13 = vcmp.le.f32.partialorder %v903_v10, %v1193_v26 }
 0x1e4   :  { %v905_v53 = vpop.eup %904  ;;  %v777_v0 = vadd.f32 %v776_v15, %v769_v17  ;;  %v681_v20 = vadd.f32 %v680_v23, %v1246_v24  ;;  %v770_v30 = vmul.f32 %v899_v44, %v1246_v24  ;;  %v616_v52 = vsub.f32 %v848_v27, %v857_v28 }
 0x1e5   :  { %v849_v31 = vsel %vm563_vm12, 1.0, %v907_v11  ;;  %v858_v2 = vsel %vm590_vm13, 1.0, %v907_v11  ;;  %vm564_vm14 = vcmp.le.f32.partialorder %v905_v53, %v1195_v39  ;;  %vm591_vm15 = vcmp.le.f32.partialorder %v905_v53, %v1193_v26 }
 0x1e6   :  { %v778_v25 = vadd.f32 %v777_v0, %v770_v30  ;;  %v771_v32 = vmul.f32 %v901_v3, %v616_v52  ;;  %v682_v1 = vadd.f32 %v681_v20, %v616_v52  ;;  %v617_v21 = vsub.f32 %v849_v31, %v858_v2 }
 0x1e7   :  { %v850_v36 = vsel %vm564_vm14, 1.0, %v907_v11  ;;  %v859_v38 = vsel %vm591_vm15, 1.0, %v907_v11 }
 0x1e8   :  { %v779_v6 = vadd.f32 %v778_v25, %v771_v32  ;;  %v618_v22 = vsub.f32 %v850_v36, %v859_v38  ;;  %v683_v8 = vadd.f32 %v682_v1, %v617_v21  ;;  %v772_v9 = vmul.f32 %v903_v10, %v617_v21 }
 0x1ea   :  { %v675_v29 = vmul.f32 %v860_v5, %v618_v22  ;;  %v780_v19 = vadd.f32 %v779_v6, %v772_v9  ;;  %v693_v5 = vld [vmem:[#allocation3] sm:$0x1] }
 0x1ec   :  { %v773_v39 = vmul.f32 %v905_v53, %v675_v29  ;;  %v684_v33 = vadd.f32 %v683_v8, %v675_v29 }
 0x1ee   :  { %v685_v26 = vrot.slane %v684_v33, 4  ;;  %v781_v34 = vadd.f32 %v780_v19, %v773_v39 }
 0x1f0   :  { %v686_v40 = vadd.f32 %v685_v26, %v684_v33  ;;  %v782_v35 = vrot.slane %v781_v34, 4 }
 0x1f2   :  { %v687_v45 = vrot.slane %v686_v40, 2  ;;  %v783_v47 = vadd.f32 %v782_v35, %v781_v34 }
 0x1f4   :  { %v688_v48 = vadd.f32 %v687_v45, %v686_v40  ;;  %v784_v49 = vrot.slane %v783_v47, 2 }
 0x1f6   :  { %v689_v12 = vrot.slane %v688_v48, 1  ;;  %v785_v41 = vadd.f32 %v784_v49, %v783_v47 }
 0x1f8   :  { %v690_v11 = vadd.f32 %v689_v12, %v688_v48  ;;  %v786_v55 = vrot.slane %v785_v41, 1 }
 0x1fa   :  { %v691_v13 = vadd.f32 %v690_v11, %v676_v50  ;;  %v787_v42 = vadd.f32 %v786_v55, %v785_v41 }
 0x1fc   :  { %692 = vst [vmem:[#allocation2] sm:$0x1] %v691_v13  ;;  %v788_v56 = vadd.f32 %v787_v42, %v764_v18 }
 0x1fe   :  { %789 = vst [vmem:[#allocation4] sm:$0x1] %v788_v56 }
 0x203   :  { %v793_v44 = vld [vmem:[#allocation2] sm:$0x1] }
 0x204   :  { %794 = vst [vmem:[%s1279_s2] sm:$0x1] %v793_v44 }
 0x205   :  { %v797_v57 = vld [vmem:[#allocation4] sm:$0x1] }
 0x206   :  { %798 = vst [vmem:[%s1279_s2 + $0x2] sm:$0x1] %v797_v57 }
 0x23f   :  { %v707_v58 = vpop.permute.xlu1 %706 }
 0x240   :  { %v741_v3 = vmul.f32 %v707_v58, %v1218_v54 }
 0x241   :  { %v866_v59 = vpop.permute.xlu0 %865 }
 0x242   :  { %v868_v60 = vunpack.i.h.bf16 %v866_v59  ;;  %v867_v62 = vunpack.i.l.bf16 %v866_v59 }
 0x243   :  { %v712_v4 = vpop.permute.xlu1 %711 }
 0x244   :  { %v740_v16 = vmul.f32 %v868_v60, %v1209_v46  ;;  %v739_v51 = vmul.f32 %v867_v62, %v1207_v37  ;;  %v742_v14 = vmul.f32 %v712_v4, %v1228_v61 }
 0x246   :  { %v748_v63 = vadd.f32 %v740_v16, %v739_v51 }
 0x247   :  { %v717_v43 = vpop.permute.xlu1 %716 }
 0x248   :  { %v749_v10 = vadd.f32 %v748_v63, %v741_v3  ;;  %v743_v23 = vmul.f32 %v717_v43, %v1238_v7 }
 0x24a   :  { %v750_v17 = vadd.f32 %v749_v10, %v742_v14 }
 0x24b   :  { %v722_v15 = vpop.permute.xlu1 %721 }
 0x24c   :  { %v751_v28 = vadd.f32 %v750_v17, %v743_v23  ;;  %v744_v53 = vmul.f32 %v722_v15, %v1246_v24 }
 0x24e   :  { %v752_v46 = vadd.f32 %v751_v28, %v744_v53 }
 0x24f   :  { %v727_v27 = vpop.permute.xlu1 %726 }
 0x250   :  { %v745_v0 = vmul.f32 %v727_v27, %v616_v52 }
 0x252   :  { %v753_v37 = vadd.f32 %v752_v46, %v745_v0 }
 0x253   :  { %v732_v20 = vpop.permute.xlu1 %731 }
 0x254   :  { %v746_v30 = vmul.f32 %v732_v20, %v617_v21 }
 0x256   :  { %v754_v54 = vadd.f32 %v753_v37, %v746_v30 }
 0x257   :  { %v737_v31 = vpop.permute.xlu1 %736 }
 0x258   :  { %v747_v2 = vmul.f32 %v737_v31, %v675_v29 }
 0x25a   :  { %v755_v25 = vadd.f32 %v754_v54, %v747_v2 }
 0x25c   :  { %v756_v32 = vrot.slane %v755_v25, 4 }
 0x25e   :  { %v757_v1 = vadd.f32 %v756_v32, %v755_v25 }
 0x260   :  { %v758_v61 = vrot.slane %v757_v1, 2 }
 0x262   :  { %v759_v36 = vadd.f32 %v758_v61, %v757_v1 }
 0x264   :  { %v760_v38 = vrot.slane %v759_v36, 1 }
 0x266   :  { %v761_v7 = vadd.f32 %v760_v38, %v759_v36 }
 0x268   :  { %v762_v6 = vadd.f32 %v761_v7, %v693_v5 }
 0x26a   :  { %763 = vst [vmem:[#allocation3] sm:$0x1] %v762_v6 }
 0x271   :  { %v795_v22 = vld [vmem:[#allocation3] sm:$0x1] }
 0x272   :  { %796 = vst [vmem:[%s1279_s2 + $0x1] sm:$0x1] %v795_v22 }

</bundles_post_ra>
